<compile_context>
chip_gen: v7x
topology: tpu7x:2x2x1
jax: 0.10.0
libtpu: 0.0.40
codegen_flags: <defaults>
</compile_context>

<pallas_src>
import functools

import jax
import jax.numpy as jnp
from jax.experimental import pallas as pl
from jax.experimental.pallas import tpu as pltpu

LN_EPS = 1e-5  # torch.nn.LayerNorm default


def _round_up(x, m):
    return ((x + m - 1) // m) * m


def _layernorm(h, gamma, beta, inv_n):
    """PyTorch LayerNorm (biased variance) over the last dim, one-pass stats.

    `h` may carry zero-padded lanes beyond the real width, so plain sums equal
    sums over the real width and `inv_n = 1/real_width`.  gamma/beta are zero on
    padded lanes, keeping the padded output exactly zero."""
    s1 = jnp.sum(h, axis=-1, keepdims=True)
    s2 = jnp.sum(h * h, axis=-1, keepdims=True)
    mu = s1 * inv_n
    var = jnp.maximum(s2 * inv_n - mu * mu, 0.0)
    inv = jax.lax.rsqrt(var + LN_EPS)
    return (h - mu) * (inv * gamma) + beta


def res_dnn_kernel(x_ref, wt_ref, p_ref, o_ref, *, num_dnn, h_real, matmul_dtype):
    inv_n = 1.0 / float(h_real)
    x = x_ref[...].astype(jnp.float32)           # (row_tile, H_pad) activations, f32
    h = x
    for i in range(num_dnn):                     # num_dnn is small & static -> unrolled
        # Linear: h @ W^T + b.  Weights pre-transposed & pre-cast (bf16); only the
        # activation operand is cast per matmul, accumulation stays f32 on the MXU.
        h = jnp.dot(h.astype(matmul_dtype), wt_ref[i],
                    preferred_element_type=jnp.float32)
        h = h + p_ref[pl.ds(i, 1), :]                          # bias_i  (1, H_pad)
        # dropout: identity (eval mode)
        h = jnp.tanh(h)
        h = _layernorm(h,
                       p_ref[pl.ds(num_dnn + i, 1), :],        # gamma_i
                       p_ref[pl.ds(2 * num_dnn + i, 1), :],    # beta_i
                       inv_n)
    h = jnp.tanh(x + h)                                        # residual + tanh
    h = _layernorm(h,
                   p_ref[pl.ds(3 * num_dnn, 1), :],            # final gamma
                   p_ref[pl.ds(3 * num_dnn + 1, 1), :],        # final beta
                   inv_n)
    o_ref[...] = h.astype(o_ref.dtype)


def prepare_params(w, b, gamma, beta, final_gamma, final_beta, *,
                   matmul_dtype=jnp.bfloat16):
    """One-time parameter prep (model-load time, NOT per forward call).

    w: (num_DNN, H_out, H_in) as stored by nn.Linear.
    Returns:
      wt:        (num_DNN, H_pad, H_pad) weights transposed to (in, out), cast to
                 the MXU dtype, zero-padded to a lane-dense H_pad (multiple of 128).
      ln_params: (3*num_DNN + 2, H_pad) f32 stack of [b; gamma; beta; final_gamma;
                 final_beta]; padded lanes are zero (keeps padding inert in LN).
    """
    num_dnn, h_out, h_in = w.shape
    assert h_out == h_in, "Res_DNN_layer uses square hidden->hidden layers"
    H = h_in
    H_pad = max(128, _round_up(H, 128))

    wt = jnp.transpose(w, (0, 2, 1)).astype(matmul_dtype)      # (num_dnn, in, out)
    if H_pad != H:
        wt = jnp.pad(wt, ((0, 0), (0, H_pad - H), (0, H_pad - H)))

    def rows(v):
        v = jnp.asarray(v, jnp.float32).reshape(-1, H)
        if H_pad != H:
            v = jnp.pad(v, ((0, 0), (0, H_pad - H)))           # padded lanes = 0
        return v

    ln_params = jnp.concatenate(
        [rows(b), rows(gamma), rows(beta), rows(final_gamma), rows(final_beta)],
        axis=0)
    assert ln_params.shape == (3 * num_dnn + 2, H_pad)
    return wt, ln_params


@functools.lru_cache(maxsize=None)
def _vmem_capacity_bytes():
    """Physical VMEM per core; conservative 64 MiB (v7x) fallback."""
    try:
        cap = getattr(pltpu.get_tpu_info(), "vmem_capacity_bytes", None)
        if cap:
            return int(cap)
    except Exception:
        pass
    return 64 * 1024 * 1024


@functools.lru_cache(maxsize=None)
def _single_buffer_supported():
    """One-time capability probe: does this build accept pipeline_mode=pl.Buffered
    on top-level BlockSpecs?  The broad except is confined to this tiny known-good
    probe kernel (it is a capability check, not error masking on the real call)."""
    if not hasattr(pl, "Buffered"):
        return False
    try:
        w_spec = pl.BlockSpec((2, 8, 128), lambda r: (0, 0, 0),
                              pipeline_mode=pl.Buffered(1))
        p_spec = pl.BlockSpec((8, 128), lambda r: (0, 0),
                              pipeline_mode=pl.Buffered(1))
    except TypeError:
        return False

    def probe_kernel(a_ref, w_ref, p_ref, o_ref):
        o_ref[...] = a_ref[...] + w_ref[0] + p_ref[...]

    try:
        fn = pl.pallas_call(
            probe_kernel,
            out_shape=jax.ShapeDtypeStruct((16, 128), jnp.float32),
            grid=(2,),
            in_specs=[pl.BlockSpec((8, 128), lambda r: (r, 0)), w_spec, p_spec],
            out_specs=pl.BlockSpec((8, 128), lambda r: (r, 0)),
        )
        jax.jit(fn).lower(
            jax.ShapeDtypeStruct((16, 128), jnp.float32),
            jax.ShapeDtypeStruct((2, 8, 128), jnp.float32),
            jax.ShapeDtypeStruct((8, 128), jnp.float32),
        ).compile()
        return True
    except Exception:
        return False


def _vmem_estimate(rt, H_pad, num_dnn, x_itemsize, out_itemsize, w_itemsize,
                   param_bufs, x_bufs):
    io = (x_bufs * x_itemsize + 2 * out_itemsize) * rt * H_pad   # pipelined tiles
    w = param_bufs * num_dnn * H_pad * H_pad * w_itemsize        # resident weights
    small = param_bufs * (3 * num_dnn + 2) * H_pad * 4           # stacked LN params
    act = 6 * rt * H_pad * 4                                     # f32 temporaries
    return io + w + small + act


def _choose_row_tile(R, requested, H_pad, x_itemsize, out_itemsize, w_itemsize,
                     num_dnn, param_bufs, x_bufs, vmem_cap):
    rt = max(8, _round_up(min(max(requested, 8), _round_up(R, 8)), 8))
    est = lambda t: _vmem_estimate(t, H_pad, num_dnn, x_itemsize, out_itemsize,
                                   w_itemsize, param_bufs, x_bufs)
    # Shrink while the estimate exceeds ~60% of physical VMEM (v7x: 64 MiB/TC).
    while rt > 8 and est(rt) > 0.6 * vmem_cap:
        rt = max(8, _round_up(rt // 2, 8))
    # Keep >= 2 grid steps so both v7x TensorCores get work; costs at most one
    # extra ~0.35us grid step on single-TC chips (v5e/v6e), which is negligible.
    if pl.cdiv(R, rt) < 2 and R > 8:
        rt = max(8, _round_up(pl.cdiv(R, 2), 8))
    return rt


def _build_call(R, H_pad, num_dnn, out_dtype, matmul_dtype, row_tile,
                single_buffer_params, x_buffer_count, vmem_limit_bytes, h_real):
    kernel = functools.partial(res_dnn_kernel, num_dnn=num_dnn, h_real=h_real,
                               matmul_dtype=matmul_dtype)

    def const_spec(shape):
        ndim = len(shape)
        if single_buffer_params:
            # Grid-invariant parameters: single-buffered to halve resident VMEM.
            return pl.BlockSpec(shape, lambda r: (0,) * ndim,
                                pipeline_mode=pl.Buffered(1))
        return pl.BlockSpec(shape, lambda r: (0,) * ndim)

    if x_buffer_count is not None and x_buffer_count != 2:
        # Optional deeper input pipelining for memory-bound small-H shapes (v6e).
        x_spec = pl.BlockSpec((row_tile, H_pad), lambda r: (r, 0),
                              pipeline_mode=pl.Buffered(x_buffer_count))
    else:
        x_spec = pl.BlockSpec((row_tile, H_pad), lambda r: (r, 0))

    return pl.pallas_call(
        kernel,
        out_shape=jax.ShapeDtypeStruct((R, H_pad), out_dtype),
        grid_spec=pltpu.PrefetchScalarGridSpec(
            num_scalar_prefetch=0,
            grid=(pl.cdiv(R, row_tile),),              # partial last block allowed
            in_specs=[
                x_spec,                                # activations (pipelined)
                const_spec((num_dnn, H_pad, H_pad)),   # W^T, VMEM-resident, bf16
                const_spec((3 * num_dnn + 2, H_pad)),  # [b; gamma; beta; fg; fb]
            ],
            out_specs=pl.BlockSpec((row_tile, H_pad), lambda r: (r, 0)),
        ),
        compiler_params=pltpu.CompilerParams(
            dimension_semantics=("parallel",),
            vmem_limit_bytes=vmem_limit_bytes),
    )


def res_dnn_layer(x, wt, ln_params, *, row_tile=512, single_buffer_params=True,
                  x_buffer_count=None, out_dtype=None, training=False):
    """Res_DNN_layer forward.  x: (R, H).  wt/ln_params from prepare_params().

    Pass x in bf16 to halve HBM traffic (matmuls are bf16 anyway; LN/tanh/residual
    math stays f32 inside the kernel).  Returns (R, H) in out_dtype (def. x.dtype)."""
    if training:
        # TODO(synk): training-mode dropout (pltpu.prng_random_bits mask) not implemented.
        raise NotImplementedError(
            "res_dnn_layer implements eval-mode (dropout=identity) only")

    R, H = x.shape
    num_dnn, H_pad, H_pad2 = wt.shape
    assert H_pad == H_pad2 and H_pad % 128 == 0 and H <= H_pad
    assert ln_params.shape == (3 * num_dnn + 2, H_pad), ln_params.shape
    out_dtype = out_dtype or x.dtype
    matmul_dtype = wt.dtype

    pm_ok = bool(single_buffer_params or x_buffer_count) and _single_buffer_supported()
    single_buffer = bool(single_buffer_params) and pm_ok
    x_bufs = x_buffer_count if (x_buffer_count and pm_ok) else None
    param_bufs = 1 if single_buffer else 2

    vmem_cap = _vmem_capacity_bytes()
    x_it = jnp.dtype(x.dtype).itemsize
    o_it = jnp.dtype(out_dtype).itemsize
    w_it = jnp.dtype(matmul_dtype).itemsize
    rt = _choose_row_tile(R, row_tile, H_pad, x_it, o_it, w_it, num_dnn,
                          param_bufs, (x_bufs or 2), vmem_cap)
    est = _vmem_estimate(rt, H_pad, num_dnn, x_it, o_it, w_it,
                         param_bufs, (x_bufs or 2))
    # Request headroom, but never above ~90% of what the chip physically has.
    vmem_limit = int(min(max(est * 3 // 2, 32 * 1024 * 1024), int(vmem_cap * 0.9)))

    x_in = x if H == H_pad else jnp.pad(x, ((0, 0), (0, H_pad - H)))
    out = _build_call(R, H_pad, num_dnn, out_dtype, matmul_dtype, rt,
                      single_buffer, x_bufs, vmem_limit, H)(x_in, wt, ln_params)
    return out if H == H_pad else out[:, :H]


def res_dnn_layer_ref(x, w, b, gamma, beta, final_gamma, final_beta,
                      matmul_dtype=jnp.bfloat16):
    """Pure-JAX reference (two-pass LayerNorm, mirrors the bf16-operand matmuls)."""
    def ln(h, g, bt):
        mu = jnp.mean(h, axis=-1, keepdims=True)
        var = jnp.mean((h - mu) ** 2, axis=-1, keepdims=True)
        return (h - mu) * jax.lax.rsqrt(var + LN_EPS) * g + bt

    h = x.astype(jnp.float32)
    shortcut = h
    for i in range(w.shape[0]):
        lhs = h.astype(matmul_dtype).astype(jnp.float32)
        rhs = w[i].T.astype(matmul_dtype).astype(jnp.float32)
        h = lhs @ rhs + b[i].astype(jnp.float32)
        h = jnp.tanh(h)
        h = ln(h, gamma[i][None, :], beta[i][None, :])
    h = jnp.tanh(shortcut + h)
    h = ln(h, final_gamma[None, :], final_beta[None, :])
    return h.astype(x.dtype)


if __name__ == "__main__":
    batch, seq, hidden = 2, 8, 32
    num_dnn = 2

    key = jax.random.PRNGKey(0)
    kx, kw, kb, kg, kbt, kfg, kfb, kx2 = jax.random.split(key, 8)

    x = jax.random.normal(kx, (batch, seq, hidden), dtype=jnp.float32)
    # nn.Linear weights stored (out, in); deterministic synthetic init.
    w = 0.1 * jax.random.normal(kw, (num_dnn, hidden, hidden), dtype=jnp.float32)
    b = 0.1 * jax.random.normal(kb, (num_dnn, hidden), dtype=jnp.float32)
    gamma = 1.0 + 0.05 * jax.random.normal(kg, (num_dnn, hidden), dtype=jnp.float32)
    beta = 0.05 * jax.random.normal(kbt, (num_dnn, hidden), dtype=jnp.float32)
    final_gamma = 1.0 + 0.05 * jax.random.normal(kfg, (hidden,), dtype=jnp.float32)
    final_beta = 0.05 * jax.random.normal(kfb, (hidden,), dtype=jnp.float32)

    # One-time prep: transpose + bf16 cast + lane-dense padding + param stacking.
    wt, ln_params = prepare_params(w, b, gamma, beta, final_gamma, final_beta)

    def check(x2d):
        out = jax.block_until_ready(res_dnn_layer(x2d, wt, ln_params))
        ref = res_dnn_layer_ref(x2d, w, b, gamma, beta, final_gamma, final_beta)
        assert out.shape == x2d.shape, out.shape
        err = float(jnp.max(jnp.abs(out.astype(jnp.float32) - ref.astype(jnp.float32))))
        assert err < 2e-4, f"mismatch vs reference: max abs err {err}"
        return out

    # (batch*seq, hidden) layout; hidden padded 32 -> 128 inside prepare/wrapper.
    out = check(x.reshape(batch * seq, hidden))
    _ = out.reshape(batch, seq, hidden)   # restore (batch, seq, hidden)

    # Ragged row count: exercises the cdiv grid with a partial last row block.
    x_ragged = jax.random.normal(kx2, (13, hidden), dtype=jnp.float32)
    _ = check(x_ragged)

    print("KERNEL_OK")
</pallas_src>

<mosaic_0001>
module attributes {stable_mosaic.version = 11 : i64} {
  func.func @res_dnn_kernel(%arg0: i32, %arg1: memref<8x128xf32, #tpu.memory_space<vmem>>, %arg2: memref<2x128x128xbf16, #tpu.memory_space<vmem>>, %arg3: memref<8x128xf32, #tpu.memory_space<vmem>>, %arg4: memref<8x128xf32, #tpu.memory_space<vmem>>) attributes {dimension_semantics = [#tpu.dimension_semantics<parallel>], iteration_bounds = array<i64: 2>, scalar_prefetch = 0 : i64, scratch_operands = 0 : i64, tpu.core_type = #tpu.core_type<tc>, window_params = [{transform_indices = @transform_0, window_bounds = array<i64: 8, 128>}, {pipeline_mode = #tpu.pipeline_mode<synchronous>, transform_indices = @transform_1, window_bounds = array<i64: 2, 128, 128>}, {pipeline_mode = #tpu.pipeline_mode<synchronous>, transform_indices = @transform_2, window_bounds = array<i64: 8, 128>}, {transform_indices = @transform_3, window_bounds = array<i64: 8, 128>}]} {
    %c0 = arith.constant 0 : index
    %c0_0 = arith.constant 0 : index
    %0 = vector.load %arg1[%c0, %c0_0] : memref<8x128xf32, #tpu.memory_space<vmem>>, vector<8x128xf32>
    %1 = arith.truncf %0 : vector<8x128xf32> to vector<8x128xbf16>
    %c0_1 = arith.constant 0 : index
    %c0_2 = arith.constant 0 : index
    %c0_3 = arith.constant 0 : index
    %2 = vector.load %arg2[%c0_1, %c0_2, %c0_3] : memref<2x128x128xbf16, #tpu.memory_space<vmem>>, vector<1x128x128xbf16>
    %3 = vector.shape_cast %2 : vector<1x128x128xbf16> to vector<128x128xbf16>
    %cst = arith.constant dense<0.000000e+00> : vector<8x128xf32>
    %4 = tpu.matmul %1, %3, %cst {dimension_numbers = #tpu.dot_dimension_numbers<[1], [0], [0], [1], [0, 0, 1, 1], [], []>} : vector<8x128xbf16>, vector<128x128xbf16>, vector<8x128xf32> -> vector<8x128xf32>
    %c0_4 = arith.constant 0 : index
    %c0_5 = arith.constant 0 : index
    %5 = vector.load %arg3[%c0_4, %c0_5] : memref<8x128xf32, #tpu.memory_space<vmem>>, vector<1x128xf32>
    %6 = vector.broadcast %5 : vector<1x128xf32> to vector<8x128xf32>
    %7 = arith.addf %4, %6 : vector<8x128xf32>
    %8 = math.tanh %7 : vector<8x128xf32>
    %c2 = arith.constant 2 : index
    %c0_6 = arith.constant 0 : index
    %9 = vector.load %arg3[%c2, %c0_6] : memref<8x128xf32, #tpu.memory_space<vmem>>, vector<1x128xf32>
    %c4 = arith.constant 4 : index
    %c0_7 = arith.constant 0 : index
    %10 = vector.load %arg3[%c4, %c0_7] : memref<8x128xf32, #tpu.memory_space<vmem>>, vector<1x128xf32>
    %cst_8 = arith.constant dense<0.000000e+00> : vector<8xf32>
    %11 = vector.multi_reduction <add>, %8, %cst_8 [1] : vector<8x128xf32> to vector<8xf32>
    %12 = vector.shape_cast %11 : vector<8xf32> to vector<8x1xf32>
    %13 = arith.mulf %8, %8 : vector<8x128xf32>
    %cst_9 = arith.constant dense<0.000000e+00> : vector<8xf32>
    %14 = vector.multi_reduction <add>, %13, %cst_9 [1] : vector<8x128xf32> to vector<8xf32>
    %15 = vector.shape_cast %14 : vector<8xf32> to vector<8x1xf32>
    %cst_10 = arith.constant 3.125000e-02 : f32
    %16 = vector.broadcast %cst_10 : f32 to vector<8x1xf32>
    %17 = arith.mulf %12, %16 : vector<8x1xf32>
    %cst_11 = arith.constant 3.125000e-02 : f32
    %18 = vector.broadcast %cst_11 : f32 to vector<8x1xf32>
    %19 = arith.mulf %15, %18 : vector<8x1xf32>
    %20 = arith.mulf %17, %17 : vector<8x1xf32>
    %21 = arith.subf %19, %20 : vector<8x1xf32>
    %cst_12 = arith.constant 0.000000e+00 : f32
    %22 = vector.broadcast %cst_12 : f32 to vector<8x1xf32>
    %23 = arith.maximumf %21, %22 : vector<8x1xf32>
    %cst_13 = arith.constant 9.99999974E-6 : f32
    %24 = vector.broadcast %cst_13 : f32 to vector<8x1xf32>
    %25 = arith.addf %23, %24 : vector<8x1xf32>
    %26 = math.rsqrt %25 : vector<8x1xf32>
    %27 = vector.broadcast %17 : vector<8x1xf32> to vector<8x128xf32>
    %28 = arith.subf %8, %27 : vector<8x128xf32>
    %29 = vector.broadcast %26 : vector<8x1xf32> to vector<8x128xf32>
    %30 = vector.broadcast %9 : vector<1x128xf32> to vector<8x128xf32>
    %31 = arith.mulf %29, %30 : vector<8x128xf32>
    %32 = arith.mulf %28, %31 : vector<8x128xf32>
    %33 = vector.broadcast %10 : vector<1x128xf32> to vector<8x128xf32>
    %34 = arith.addf %32, %33 : vector<8x128xf32>
    %35 = arith.truncf %34 : vector<8x128xf32> to vector<8x128xbf16>
    %c1 = arith.constant 1 : index
    %c0_14 = arith.constant 0 : index
    %c0_15 = arith.constant 0 : index
    %36 = vector.load %arg2[%c1, %c0_14, %c0_15] : memref<2x128x128xbf16, #tpu.memory_space<vmem>>, vector<1x128x128xbf16>
    %37 = vector.shape_cast %36 : vector<1x128x128xbf16> to vector<128x128xbf16>
    %cst_16 = arith.constant dense<0.000000e+00> : vector<8x128xf32>
    %38 = tpu.matmul %35, %37, %cst_16 {dimension_numbers = #tpu.dot_dimension_numbers<[1], [0], [0], [1], [0, 0, 1, 1], [], []>} : vector<8x128xbf16>, vector<128x128xbf16>, vector<8x128xf32> -> vector<8x128xf32>
    %c1_17 = arith.constant 1 : index
    %c0_18 = arith.constant 0 : index
    %39 = vector.load %arg3[%c1_17, %c0_18] : memref<8x128xf32, #tpu.memory_space<vmem>>, vector<1x128xf32>
    %40 = vector.broadcast %39 : vector<1x128xf32> to vector<8x128xf32>
    %41 = arith.addf %38, %40 : vector<8x128xf32>
    %42 = math.tanh %41 : vector<8x128xf32>
    %c3 = arith.constant 3 : index
    %c0_19 = arith.constant 0 : index
    %43 = vector.load %arg3[%c3, %c0_19] : memref<8x128xf32, #tpu.memory_space<vmem>>, vector<1x128xf32>
    %c5 = arith.constant 5 : index
    %c0_20 = arith.constant 0 : index
    %44 = vector.load %arg3[%c5, %c0_20] : memref<8x128xf32, #tpu.memory_space<vmem>>, vector<1x128xf32>
    %cst_21 = arith.constant dense<0.000000e+00> : vector<8xf32>
    %45 = vector.multi_reduction <add>, %42, %cst_21 [1] : vector<8x128xf32> to vector<8xf32>
    %46 = vector.shape_cast %45 : vector<8xf32> to vector<8x1xf32>
    %47 = arith.mulf %42, %42 : vector<8x128xf32>
    %cst_22 = arith.constant dense<0.000000e+00> : vector<8xf32>
    %48 = vector.multi_reduction <add>, %47, %cst_22 [1] : vector<8x128xf32> to vector<8xf32>
    %49 = vector.shape_cast %48 : vector<8xf32> to vector<8x1xf32>
    %cst_23 = arith.constant 3.125000e-02 : f32
    %50 = vector.broadcast %cst_23 : f32 to vector<8x1xf32>
    %51 = arith.mulf %46, %50 : vector<8x1xf32>
    %cst_24 = arith.constant 3.125000e-02 : f32
    %52 = vector.broadcast %cst_24 : f32 to vector<8x1xf32>
    %53 = arith.mulf %49, %52 : vector<8x1xf32>
    %54 = arith.mulf %51, %51 : vector<8x1xf32>
    %55 = arith.subf %53, %54 : vector<8x1xf32>
    %cst_25 = arith.constant 0.000000e+00 : f32
    %56 = vector.broadcast %cst_25 : f32 to vector<8x1xf32>
    %57 = arith.maximumf %55, %56 : vector<8x1xf32>
    %cst_26 = arith.constant 9.99999974E-6 : f32
    %58 = vector.broadcast %cst_26 : f32 to vector<8x1xf32>
    %59 = arith.addf %57, %58 : vector<8x1xf32>
    %60 = math.rsqrt %59 : vector<8x1xf32>
    %61 = vector.broadcast %51 : vector<8x1xf32> to vector<8x128xf32>
    %62 = arith.subf %42, %61 : vector<8x128xf32>
    %63 = vector.broadcast %60 : vector<8x1xf32> to vector<8x128xf32>
    %64 = vector.broadcast %43 : vector<1x128xf32> to vector<8x128xf32>
    %65 = arith.mulf %63, %64 : vector<8x128xf32>
    %66 = arith.mulf %62, %65 : vector<8x128xf32>
    %67 = vector.broadcast %44 : vector<1x128xf32> to vector<8x128xf32>
    %68 = arith.addf %66, %67 : vector<8x128xf32>
    %69 = arith.addf %0, %68 : vector<8x128xf32>
    %70 = math.tanh %69 : vector<8x128xf32>
    %c6 = arith.constant 6 : index
    %c0_27 = arith.constant 0 : index
    %71 = vector.load %arg3[%c6, %c0_27] : memref<8x128xf32, #tpu.memory_space<vmem>>, vector<1x128xf32>
    %c7 = arith.constant 7 : index
    %c0_28 = arith.constant 0 : index
    %72 = vector.load %arg3[%c7, %c0_28] : memref<8x128xf32, #tpu.memory_space<vmem>>, vector<1x128xf32>
    %cst_29 = arith.constant dense<0.000000e+00> : vector<8xf32>
    %73 = vector.multi_reduction <add>, %70, %cst_29 [1] : vector<8x128xf32> to vector<8xf32>
    %74 = vector.shape_cast %73 : vector<8xf32> to vector<8x1xf32>
    %75 = arith.mulf %70, %70 : vector<8x128xf32>
    %cst_30 = arith.constant dense<0.000000e+00> : vector<8xf32>
    %76 = vector.multi_reduction <add>, %75, %cst_30 [1] : vector<8x128xf32> to vector<8xf32>
    %77 = vector.shape_cast %76 : vector<8xf32> to vector<8x1xf32>
    %cst_31 = arith.constant 3.125000e-02 : f32
    %78 = vector.broadcast %cst_31 : f32 to vector<8x1xf32>
    %79 = arith.mulf %74, %78 : vector<8x1xf32>
    %cst_32 = arith.constant 3.125000e-02 : f32
    %80 = vector.broadcast %cst_32 : f32 to vector<8x1xf32>
    %81 = arith.mulf %77, %80 : vector<8x1xf32>
    %82 = arith.mulf %79, %79 : vector<8x1xf32>
    %83 = arith.subf %81, %82 : vector<8x1xf32>
    %cst_33 = arith.constant 0.000000e+00 : f32
    %84 = vector.broadcast %cst_33 : f32 to vector<8x1xf32>
    %85 = arith.maximumf %83, %84 : vector<8x1xf32>
    %cst_34 = arith.constant 9.99999974E-6 : f32
    %86 = vector.broadcast %cst_34 : f32 to vector<8x1xf32>
    %87 = arith.addf %85, %86 : vector<8x1xf32>
    %88 = math.rsqrt %87 : vector<8x1xf32>
    %89 = vector.broadcast %79 : vector<8x1xf32> to vector<8x128xf32>
    %90 = arith.subf %70, %89 : vector<8x128xf32>
    %91 = vector.broadcast %88 : vector<8x1xf32> to vector<8x128xf32>
    %92 = vector.broadcast %71 : vector<1x128xf32> to vector<8x128xf32>
    %93 = arith.mulf %91, %92 : vector<8x128xf32>
    %94 = arith.mulf %90, %93 : vector<8x128xf32>
    %95 = vector.broadcast %72 : vector<1x128xf32> to vector<8x128xf32>
    %96 = arith.addf %94, %95 : vector<8x128xf32>
    %c0_35 = arith.constant 0 : index
    %c0_36 = arith.constant 0 : index
    %97 = vector.load %arg4[%c0_35, %c0_36] : memref<8x128xf32, #tpu.memory_space<vmem>>, vector<8x128xf32>
    tpu.vector_store %arg4[%c0_35, %c0_36], %96 {strides = array<i32>} : memref<8x128xf32, #tpu.memory_space<vmem>>, vector<8x128xf32>,
    return
  }
  func.func @transform_0(%arg0: i32) -> (i32, i32) {
    %c0_i32 = arith.constant 0 : i32
    %c0_i32_0 = arith.constant 0 : i32
    return %arg0, %c0_i32 : i32, i32
  }
  func.func @transform_1(%arg0: i32) -> (i32, i32, i32) {
    %c0_i32 = arith.constant 0 : i32
    %c0_i32_0 = arith.constant 0 : i32
    %c0_i32_1 = arith.constant 0 : i32
    %c0_i32_2 = arith.constant 0 : i32
    return %c0_i32, %c0_i32_0, %c0_i32_1 : i32, i32, i32
  }
  func.func @transform_2(%arg0: i32) -> (i32, i32) {
    %c0_i32 = arith.constant 0 : i32
    %c0_i32_0 = arith.constant 0 : i32
    %c0_i32_1 = arith.constant 0 : i32
    return %c0_i32, %c0_i32_0 : i32, i32
  }
  func.func @transform_3(%arg0: i32) -> (i32, i32) {
    %c0_i32 = arith.constant 0 : i32
    %c0_i32_0 = arith.constant 0 : i32
    return %arg0, %c0_i32 : i32, i32
  }
}

</mosaic_0001>

<bundles_post_ra>
// kernel: tpu_custom_call.1
= control target key start
LH: loop header
LB: loop body
LE: loop exit
PB: predicated region body
PF: predicated region fallthrough
CT: control target
= control target key end

     0   :  { %8 = vsyncpa [#allocation3], 0  ;;  %s1264_s0 = inlined_call_operand.hbm [shape: f32[16,128], index: 0, kind: input, shape index: {}]   ;;  %s1265_s1 = inlined_call_operand.hbm [shape: bf16[2,128,128], index: 1, kind: input, shape index: {}]   ;;  %s1266_s2 = inlined_call_operand.hbm [shape: f32[8,128], index: 2, kind: input, shape index: {}]   ;;  %s1267_s3 = inlined_call_operand.hbm [shape: f32[16,128], index: 3, kind: output, shape index: {}]  }
   0x1   :  { %10 = vsyncpa [#allocation3 + $0x1], 0 }
   0x2   :  { %11 = vsyncpa [#allocation6], 0 }
   0x3   :  { %12 = vsyncpa [#allocation4], 0 }
   0x4   :  { %14 = vsyncpa [#allocation4 + $0x1], 0  ;;  %s1005_s12 = smov 0   ;;  %s1007_s13 = smov 0  }
   0x5   :  { %s1009_s14 = smov 0   ;;  %s1011_s15 = smov 0  }
   0x6 LB: > { %s1026_s16 = sadd.s32 4294967295, %s975_s15   ;;  %s622_s17 = sadd.s32 4294967294, %s975_s15   ;;  %s975_s15 = sphi %s1011_s15, %s1287_s15   ;;  %s971_s14 = sphi %s1009_s14, %s1286_s14   ;;  %s967_s13 = sphi %s1007_s13, %s1285_s13   ;;  %s963_s12 = sphi %s1005_s12, %s1284_s12  }
   0x7   : > { %p40_p0 = scmp.ne.s32.totalorder %s967_s13, %s963_s12  ;;  %p1268_p1 = scmp.eq.s32.totalorder %s1026_s16, 0 }
   0x8   : > { %p112_p3 = scmp.eq.s32.totalorder %s622_s17, 1  ;;  %p623_p5 = scmp.ge.s32.totalorder %s975_s15, 1 }
   0x9   : > { %p1035_p4 = por %p1268_p1, %p40_p0  ;;  %p119_p7 = scmp.lt.s32.totalorder %s975_s15, 3 }
   0xa   : > { %p1040_p6 = por %p112_p3, %p40_p0  ;;  %s977_s21 = smov [#allocation5]  }
   0xb   : > { %s1271_s18 = scalar_select %p1035_p4, 1, 0 }
   0xc   : > { %s1272_s19 = scalar_select %p1040_p6, 1, 0 }
   0xd   : > { %p1045_p8 = pnand %p623_p5, %p119_p7  ;;  %s131_s22 = sshll.u32 %s977_s21, 4  ;;  %s1049_s22 = int_to_ptr.vmem [resolvable:$true] %s131_s22 }
   0xe   : > { %s978_s24 = smov [#allocation7]   ;;  %s819_s28 = scalar_lea.hbm %s1265_s1, 2048 }
   0xf   : > { %p732_p9 = pneg %p1045_p8  ;;  %s145_s25 = sshll.u32 %s978_s24, 4  ;;  %s1060_s25 = int_to_ptr.vmem [resolvable:$true] %s145_s25 }
  0x10   : > { %p820_p12 = scmp.ne.s32.totalorder %s1265_s1, %s819_s28  ;;  %p826_p5 = scmp.lt.u32.totalorder %s819_s28, %s1265_s1 }
  0x11   : > { %p1056_p11 = pnand %p732_p9, %p1268_p1 }
  0x13   : > { %p821_p13 = pneg %p1056_p11 }
  0x15   : > { %p822_p0 = pnand %p821_p13, %p820_p12 }
  0x17   : > { %p823_p3 = pneg %p822_p0 }
  0x19   : > { %p828_p7 = pnand %p826_p5, %p823_p3 }
  0x1b   : > { %831 = shalt.err (!%p828_p7)
}
  0x1c   : > { %s832_s6 = scalar_lea.vmem %s1049_s22, 2048  ;;  %p840_p2 = scmp.lt.s32.totalorder %s1049_s22, %s1049_s22 }
  0x1d   : > { %p833_p9 = scmp.ne.s32.totalorder %s1049_s22, %s832_s6  ;;  %p841_p12 = scmp.lt.s32.totalorder %s832_s6, %s832_s6 }
  0x1f   : > { %p835_p10 = pnand %p833_p9, %p821_p13  ;;  %p842_p0 = por %p841_p12, %p840_p2 }
  0x21   : > { %p836_p1 = pneg %p835_p10 }
  0x23   : > { %p843_p6 = pnand %p842_p0, %p836_p1 }
  0x25   : > { %846 = shalt.err (!%p843_p6)
}
  0x26   : > { %s979_s7 = smov 64   ;;  %s980_s8 = smov 4  }
  0x27   : > { %735 = dma.hbm_to_vmem [thread:$0]  (!%p1056_p11), %s1265_s1, 2048, %s1049_s22, [#allocation6], %s979_s7, %s979_s7, %s980_s8  }
  0x28   : > { %s847_s21 = scalar_lea.hbm %s1266_s2, 128 }
  0x29   : > { %p848_p2 = scmp.ne.s32.totalorder %s1266_s2, %s847_s21  ;;  %p854_p10 = scmp.lt.u32.totalorder %s847_s21, %s1266_s2 }
  0x2b   : > { %p850_p1 = pnand %p848_p2, %p821_p13 }
  0x2d   : > { %p851_p6 = pneg %p850_p1 }
  0x2f   : > { %p856_p3 = pnand %p854_p10, %p851_p6 }
  0x31   : > { %859 = shalt.err (!%p856_p3)
}
  0x32   : > { %s860_s22 = scalar_lea.vmem %s1060_s25, 128  ;;  %p868_p12 = scmp.lt.s32.totalorder %s1060_s25, %s1060_s25 }
  0x33   : > { %p861_p5 = scmp.ne.s32.totalorder %s1060_s25, %s860_s22  ;;  %p869_p0 = scmp.lt.s32.totalorder %s860_s22, %s860_s22 }
  0x35   : > { %p863_p7 = pnand %p861_p5, %p821_p13  ;;  %p870_p2 = por %p869_p0, %p868_p12 }
  0x37   : > { %p864_p9 = pneg %p863_p7 }
  0x39   : > { %p871_p1 = pnand %p870_p2, %p864_p9 }
  0x3b   : > { %874 = shalt.err (!%p871_p1)
}
  0x3c   : > { %738 = dma.hbm_to_vmem [thread:$0]  (!%p1056_p11), %s1266_s2, 128, %s1060_s25, [#allocation6]  }
  0x3d   : > { %s1115_s4 = sadd.s32 1, %s975_s15   ;;  %s27_s23 = sadd.s32 1, %s971_s14 }
  0x3e   : > { %s24_s5 = ssub.s32 %s975_s15, %s1115_s4  ;;  %p34_p13 = scmp.ne.s32.totalorder %s971_s14, %s967_s13 }
  0x3f   : > { %p25_p6 = scmp.eq.s32.totalorder %s24_s5, 0  ;;  %p35_p10 = scmp.eq.s32.totalorder %s975_s15, 0 }
  0x40   : > { %p1275_p3 = scmp.eq.s32.totalorder %s1026_s16, 1  ;;  %p749_p7 = scmp.lt.s32.totalorder %s975_s15, 2 }
  0x41   : > { %s1131_s7 = scalar_select %p25_p6, %s971_s14, %s27_s23  }
  0x42   : > { %p1125_p5 = por %p1275_p3, %p34_p13  ;;  %p36_p9 = por %p35_p10, %p34_p13 }
  0x43   : > { %s156_s8 = sand.u32 1, %s971_s14   ;;  %s628_s25 = sshll.u32 %s975_s15, 7 }
  0x44   : > { %s1276_s6 = scalar_select %p1125_p5, 1, 0 }
  0x45   : > { %s627_s9 = sshll.u32 %s156_s8, 3  ;;  %s1138_s17 = scalar_lea.hbm %s1264_s0, %s628_s25 }
  0x46   : > { %s160_s21 = scalar_lea.vmem [#allocation2], %s627_s9  ;;  %p1142_p11 = pnand %p749_p7, %p36_p9 }
  0x47   : > { %s167_s24 = sshll.u32 %s160_s21, 4  ;;  %s157_s27 = scalar_lea.sflag [#allocation3], %s156_s8  ;;  %s1140_s24 = int_to_ptr.vmem [resolvable:$true] %s167_s24 }
  0x48   : > { %s875_s28 = scalar_lea.hbm %s1138_s17, 128  ;;  %p877_p0 = pneg %p1142_p11 }
  0x49   : > { %p876_p12 = scmp.ne.s32.totalorder %s1138_s17, %s875_s28  ;;  %s880_s30 = scalar_lea.hbm %s1264_s0, 256 }
  0x4a   : > { %p881_p13 = scmp.lt.u32.totalorder %s1138_s17, %s1264_s0  ;;  %p882_p6 = scmp.lt.u32.totalorder %s880_s30, %s875_s28 }
  0x4b   : > { %p878_p2 = pnand %p877_p0, %p876_p12  ;;  %p884_p3 = scmp.lt.u32.totalorder %s875_s28, %s1138_s17 }
  0x4c   : > { %p883_p10 = por %p882_p6, %p881_p13 }
  0x4d   : > { %p879_p1 = pneg %p878_p2 }
  0x4e   : > { %p885_p7 = por %p884_p3, %p883_p10 }
  0x50   : > { %p886_p9 = pnand %p885_p7, %p879_p1 }
  0x52   : > { %889 = shalt.err (!%p886_p9)
}
  0x53   : > { %s890_s8 = scalar_lea.vmem %s1140_s24, 128  ;;  %s981_s9 = smov [#allocation2]  }
  0x54   : > { %p891_p12 = scmp.ne.s32.totalorder %s1140_s24, %s890_s8  ;;  %s895_s25 = sshll.u32 %s981_s9, 4  ;;  %s896_s25 = int_to_ptr.vmem [resolvable:$false] %s895_s25 }
  0x55   : > { %s897_s10 = scalar_lea.vmem %s896_s25, 256  ;;  %p898_p4 = scmp.lt.s32.totalorder %s1140_s24, %s896_s25 }
  0x56   : > { %p893_p2 = pnand %p891_p12, %p877_p0  ;;  %p899_p13 = scmp.lt.s32.totalorder %s897_s10, %s890_s8 }
  0x58   : > { %p894_p5 = pneg %p893_p2  ;;  %p900_p6 = por %p899_p13, %p898_p4 }
  0x5a   : > { %p901_p10 = pnand %p900_p6, %p894_p5 }
  0x5c   : > { %904 = shalt.err (!%p901_p10)
}
  0x5d   : > { %742 = dma.hbm_to_vmem [thread:$0]  (!%p1142_p11), %s1138_s17, 128, %s1140_s24, %s157_s27  }
  0x5e   : > { %176 = sbr.rel (%p1045_p8) target bundleno = 1129 (0x469), region = 32  ;;  %s1174_s11 = sand.u32 (!%p1045_p8), 1, %s967_s13  }
  0x5f   : > { %s630_s21 = sshll.u32 (!%p1045_p8), %s1174_s11, 3  ;;  %s179_s28 = scalar_lea.sflag (!%p1045_p8), [#allocation3], %s1174_s11 }
  0x60   : > { %s1180_s22 = scalar_lea.vmem (!%p1045_p8), [#allocation2], %s630_s21  ;;  %p1278_p4 = scmp.ne.s32.totalorder (!%p1045_p8), %s1271_s18, 0 }
  0x65   : > { %950 = dma.done.wait (%p1278_p4), %s179_s28, 128  }
  0x66   : > { %952 = vsyncadd (%p1278_p4), %s179_s28, 4294967168  ;;  %p1279_p5 = scmp.eq.s32.totalorder %s1026_s16, 0 }
  0x68   : > { %954 = dma.done.wait (%p1279_p5), [#allocation6], 2176   ;;  %p1280_p8 = pmov %p1279_p5 }
  0x69   : > { %v982_v0 = vmov 0.0   ;;  %vm983_vm0 = vmmov 0   ;;  %v791_v1 = vld [vmem:[#allocation5] sm:$0xff]   ;;  %v792_v2 = vld [vmem:[#allocation5 + $0x8] sm:$0xff]   ;;  %v793_v3 = vld [vmem:[#allocation5 + $0x10] sm:$0xff]   ;;  %s659_s18 = sshll.u32 %s1026_s16, 7 }
  0x6a   : > { %956 = vsyncadd (%p1280_p8), [#allocation6], 4294965120  ;;  %680 = vmatprep.subr.bf16.mxu0 %v982_v0  ;;  %696 = vmatprep.mubr.msk.bf16.mxu0 %vm983_vm0, %v982_v0  ;;  %v794_v4 = vld [vmem:[#allocation5 + $0x18] sm:$0xff]   ;;  %v795_v5 = vld [vmem:[#allocation5 + $0x20] sm:$0xff]   ;;  %s212_s20 = scalar_lea.vmem [#allocation8], %s630_s21  ;;  %s1220_s27 = scalar_lea.hbm %s1267_s3, %s659_s18 }
  0x6b   : > { %700 = vmatprep.subr.bf16.mxu1 %v982_v0  ;;  %716 = vmatprep.mubr.msk.bf16.mxu1 %vm983_vm0, %v982_v0  ;;  %v796_v6 = vld [vmem:[#allocation5 + $0x28] sm:$0xff]   ;;  %v797_v7 = vld [vmem:[#allocation5 + $0x30] sm:$0xff]   ;;  %v798_v8 = vld [vmem:[#allocation5 + $0x38] sm:$0xff]   ;;  %s533_s17 = sshll.u32 %s212_s20, 4  ;;  %s520_s29 = scalar_lea.sflag [#allocation4], %s1174_s11  ;;  %s1222_s17 = int_to_ptr.vmem [resolvable:$true] %s533_s17 }
  0x6c   : > { %681 = vmatpush3.bf16.msra.mxu0 %v791_v1  ;;  %v1201_v9 = vld [vmem:[%s1180_s22] sm:$0xff]  ;;  %v634_v11 = vld [vmem:[#allocation7] ss:$0 sm:$0xff]  ;;  %v800_v20 = vld [vmem:[#allocation5 + $0x48] sm:$0xff]   ;;  %s905_s30 = scalar_lea.vmem %s1222_s17, 128  ;;  %p1281_p0 = scmp.ne.s32.totalorder %s1276_s6, 0 }
  0x6d   : > { %682 = vmatprep.subr.bf16.mxu0 %v982_v0  ;;  %v215_v10 = vpack.c.bf16 %v1201_v9, %v1201_v9  ;;  %v799_v19 = vld [vmem:[#allocation5 + $0x40] sm:$0xff]   ;;  %v801_v21 = vld [vmem:[#allocation5 + $0x50] sm:$0xff]   ;;  %v802_v22 = vld [vmem:[#allocation5 + $0x58] sm:$0xff]   ;;  %p906_p11 = scmp.ne.s32.totalorder %s1222_s17, %s905_s30  ;;  %s984_s16 = smov [#allocation8]  }
  0x6e   : > { %701 = vmatpush3.bf16.msra.mxu1 %v799_v19  ;;  %v803_v23 = vld [vmem:[#allocation5 + $0x60] sm:$0xff]   ;;  %v804_v24 = vld [vmem:[#allocation5 + $0x68] sm:$0xff]   ;;  %v805_v25 = vld [vmem:[#allocation5 + $0x70] sm:$0xff]   ;;  %s909_s23 = sshll.u32 %s984_s16, 4  ;;  %s910_s23 = int_to_ptr.vmem [resolvable:$false] %s909_s23 }
  0x6f   : > { %702 = vmatprep.subr.bf16.mxu1 %v982_v0  ;;  %v806_v26 = vld [vmem:[#allocation5 + $0x78] sm:$0xff]   ;;  %v643_v35 = vld [vmem:[#allocation7 + $0x2] ss:$0 sm:$0xff]  ;;  %v644_v39 = vld [vmem:[#allocation7 + $0x4] ss:$0 sm:$0xff]  ;;  %p907_p1 = pnand %p906_p11, %p1281_p0  ;;  %s911_s5 = scalar_lea.vmem %s910_s23, 256 }
  0x70   : > { %683 = vmatpush3.bf16.msra.mxu0 %v792_v2  ;;  %v645_v43 = vld [vmem:[#allocation7 + $0x1] ss:$0 sm:$0xff]  ;;  %v654_v59 = vld [vmem:[#allocation7 + $0x3] ss:$0 sm:$0xff]  ;;  %v655_v63 = vld [vmem:[#allocation7 + $0x5] ss:$0 sm:$0xff]  ;;  %p912_p7 = scmp.lt.s32.totalorder %s1222_s17, %s910_s23  ;;  %p913_p9 = scmp.lt.s32.totalorder %s911_s5, %s905_s30 }
  0x71   : > { %684 = vmatprep.subr.bf16.mxu0 %v982_v0  ;;  %p908_p3 = pneg %p907_p1 }
  0x72   : > { %703 = vmatpush3.bf16.msra.mxu1 %v800_v20  ;;  %p914_p12 = por %p913_p9, %p912_p7 }
  0x73   : > { %704 = vmatprep.subr.bf16.mxu1 %v982_v0 }
  0x74   : > { %685 = vmatpush3.bf16.msra.mxu0 %v793_v3  ;;  %p915_p2 = pnand %p914_p12, %p908_p3 }
  0x75   : > { %686 = vmatprep.subr.bf16.mxu0 %v982_v0 }
  0x76   : > { %705 = vmatpush3.bf16.msra.mxu1 %v801_v21 }
  0x77   : > { %706 = vmatprep.subr.bf16.mxu1 %v982_v0 }
  0x78   : > { %687 = vmatpush3.bf16.msra.mxu0 %v794_v4 }
  0x79   : > { %688 = vmatprep.subr.bf16.mxu0 %v982_v0 }
  0x7a   : > { %707 = vmatpush3.bf16.msra.mxu1 %v802_v22 }
  0x7b   : > { %708 = vmatprep.subr.bf16.mxu1 %v982_v0 }
  0x7c   : > { %689 = vmatpush3.bf16.msra.mxu0 %v795_v5 }
  0x7d   : > { %690 = vmatprep.subr.bf16.mxu0 %v982_v0 }
  0x7e   : > { %709 = vmatpush3.bf16.msra.mxu1 %v803_v23 }
  0x7f   : > { %710 = vmatprep.subr.bf16.mxu1 %v982_v0 }
  0x80   : > { %691 = vmatpush3.bf16.msra.mxu0 %v796_v6 }
  0x81   : > { %692 = vmatprep.subr.bf16.mxu0 %v982_v0 }
  0x82   : > { %711 = vmatpush3.bf16.msra.mxu1 %v804_v24 }
  0x83   : > { %712 = vmatprep.subr.bf16.mxu1 %v982_v0 }
  0x84   : > { %693 = vmatpush3.bf16.msra.mxu0 %v797_v7 }
  0x85   : > { %694 = vmatprep.subr.bf16.mxu0 %v982_v0 }
  0x86   : > { %713 = vmatpush3.bf16.msra.mxu1 %v805_v25 }
  0x87   : > { %714 = vmatprep.subr.bf16.mxu1 %v982_v0 }
  0x88   : > { %695 = vmatpush3.bf16.msra.mxu0 %v798_v8 }
  0x8a   : > { %715 = vmatpush3.bf16.msra.mxu1 %v806_v26 }
  0x8b   : > { %697 = vmatmul.mubr.bf16.vlgmr.msra.gmra.mrb[0].mxu0 %v215_v10 }
 0x15e   : > { %v319_v12 = vpop.f32.mrb[0].mxu0 }
 0x15f   : > { %v320_v13 = vadd.f32 %v634_v11, %v319_v12  ;;  %v698_v14 = vpop.f32.mrb[1].mxu0 }
 0x160   : > { %v322_v15 = vpop.f32.mrb[2].mxu0  ;;  %v656_v14 = vld [vmem:[#allocation7 + $0x6] ss:$0 sm:$0xff] }
 0x161   : > { %807 = vtanh.f32 %v320_v13  ;;  %v699_v16 = vpop.f32.mrb[3].mxu0 }
 0x16b   : > { %v808_v17 = vpop.eup %807 }
 0x16c   : > { %328 = vadd.xlane.f32.xlu0 %v808_v17  ;;  %v330_v18 = vmul.f32 %v808_v17, %v808_v17 }
 0x170   : > { %331 = vadd.xlane.f32.xlu0 %v330_v18 }
 0x1f9   : > { %v329_v27 = vpop.xlane.xlu0 %328 }
 0x1fa   : > { %v333_v28 = vmul.f32 0.03125, %v329_v27 }
 0x1fc   : > { %v335_v30 = vmul.f32 %v333_v28, %v333_v28  ;;  %v340_v37 = vsub.f32 %v808_v17, %v333_v28  ;;  %v657_v17 = vld [vmem:[#allocation7 + $0x7] ss:$0 sm:$0xff] }
 0x1fd   : > { %v332_v29 = vpop.xlane.xlu0 %331 }
 0x1fe   : > { %v334_v31 = vmul.f32 0.03125, %v332_v29 }
 0x200   : > { %v336_v32 = vsub.f32 %v334_v31, %v335_v30 }
 0x202   : > { %v337_v33 = vmax.f32 %v336_v32, 0.0 }
 0x204   : > { %v338_v34 = vadd.f32 1e-05, %v337_v33 }
 0x206   : > { %809 = vrsqrt.f32 %v338_v34 }
 0x210   : > { %v810_v36 = vpop.eup %809 }
 0x211   : > { %v345_v38 = vmul.f32 %v810_v36, %v643_v35 }
 0x213   : > { %v346_v40 = vmul.f32 %v345_v38, %v340_v37 }
 0x215   : > { %v351_v41 = vadd.f32 %v644_v39, %v346_v40 }
 0x217   : > { %v352_v42 = vpack.c.bf16 %v351_v41, %v351_v41 }
 0x219   : > { %717 = vmatmul.mubr.bf16.vlgmr.msra.gmra.mrb[0].mxu1 %v352_v42 }
 0x2ec   : > { %v457_v44 = vpop.f32.mrb[0].mxu1 }
 0x2ed   : > { %v458_v45 = vadd.f32 %v645_v43, %v457_v44  ;;  %v718_v46 = vpop.f32.mrb[1].mxu1 }
 0x2ee   : > { %v460_v47 = vpop.f32.mrb[2].mxu1 }
 0x2ef   : > { %811 = vtanh.f32 %v458_v45  ;;  %v719_v48 = vpop.f32.mrb[3].mxu1 }
 0x2f9   : > { %v812_v49 = vpop.eup %811 }
 0x2fa   : > { %466 = vadd.xlane.f32.xlu1 %v812_v49  ;;  %v468_v50 = vmul.f32 %v812_v49, %v812_v49 }
 0x2fe   : > { %469 = vadd.xlane.f32.xlu1 %v468_v50 }
 0x387   : > { %v467_v51 = vpop.xlane.xlu1 %466 }
 0x388   : > { %v471_v52 = vmul.f32 0.03125, %v467_v51 }
 0x38a   : > { %v473_v54 = vmul.f32 %v471_v52, %v471_v52  ;;  %v478_v61 = vsub.f32 %v812_v49, %v471_v52 }
 0x38b   : > { %v470_v53 = vpop.xlane.xlu1 %469 }
 0x38c   : > { %v472_v55 = vmul.f32 0.03125, %v470_v53 }
 0x38e   : > { %v474_v56 = vsub.f32 %v472_v55, %v473_v54 }
 0x390   : > { %v475_v57 = vmax.f32 %v474_v56, 0.0 }
 0x392   : > { %v476_v58 = vadd.f32 1e-05, %v475_v57 }
 0x394   : > { %813 = vrsqrt.f32 %v476_v58 }
 0x39e   : > { %v814_v60 = vpop.eup %813 }
 0x39f   : > { %v483_v62 = vmul.f32 %v814_v60, %v654_v59 }
 0x3a1   : > { %v484_v0 = vmul.f32 %v483_v62, %v478_v61 }
 0x3a3   : > { %v489_v1 = vadd.f32 %v655_v63, %v484_v0 }
 0x3a5   : > { %v490_v2 = vadd.f32 %v489_v1, %v1201_v9 }
 0x3a7   : > { %815 = vtanh.f32 %v490_v2 }
 0x3b1   : > { %v816_v3 = vpop.eup %815 }
 0x3b2   : > { %494 = vadd.xlane.f32.xlu0 %v816_v3  ;;  %v496_v4 = vmul.f32 %v816_v3, %v816_v3 }
 0x3b4   : > { %497 = vadd.xlane.f32.xlu1 %v496_v4 }
 0x43f   : > { %v495_v5 = vpop.xlane.xlu0 %494 }
 0x440   : > { %v499_v6 = vmul.f32 0.03125, %v495_v5 }
 0x441   : > { %v498_v7 = vpop.xlane.xlu1 %497 }
 0x442   : > { %v501_v8 = vmul.f32 %v499_v6, %v499_v6  ;;  %v500_v10 = vmul.f32 0.03125, %v498_v7  ;;  %v506_v15 = vsub.f32 %v816_v3, %v499_v6 }
 0x444   : > { %v502_v11 = vsub.f32 %v500_v10, %v501_v8 }
 0x446   : > { %v503_v12 = vmax.f32 %v502_v11, 0.0 }
 0x448   : > { %v504_v13 = vadd.f32 1e-05, %v503_v12 }
 0x44a   : > { %817 = vrsqrt.f32 %v504_v13 }
 0x454   : > { %v818_v9 = vpop.eup %817 }
 0x455   : > { %v511_v16 = vmul.f32 %v818_v9, %v656_v14 }
 0x457   : > { %v512_v18 = vmul.f32 %v511_v16, %v506_v15 }
 0x459   : > { %v517_v19 = vadd.f32 %v657_v17, %v512_v18 }
 0x45b   : > { %518 = vst [vmem:[%s212_s20] sm:$0xff] %v517_v19 }
 0x45c   : > { %918 = shalt.err (!%p915_p2)
}
 0x45d   : > { %s919_s8 = scalar_lea.hbm %s1220_s27, 128  ;;  %s923_s10 = scalar_lea.hbm %s1267_s3, 256 }
 0x45e   : > { %p920_p13 = scmp.ne.s32.totalorder %s1220_s27, %s919_s8  ;;  %p924_p4 = scmp.lt.u32.totalorder %s1220_s27, %s1267_s3 }
 0x45f   : > { %p925_p5 = scmp.lt.u32.totalorder %s923_s10, %s919_s8  ;;  %p927_p11 = scmp.lt.u32.totalorder %s919_s8, %s1220_s27 }
 0x460   : > { %p921_p6 = pnand %p920_p13, %p1281_p0 }
 0x461   : > { %p926_p8 = por %p925_p5, %p924_p4 }
 0x462   : > { %p922_p10 = pneg %p921_p6 }
 0x463   : > { %p928_p1 = por %p927_p11, %p926_p8 }
 0x465   : > { %p929_p3 = pnand %p928_p1, %p922_p10 }
 0x467   : > { %932 = shalt.err (!%p929_p3)
}
 0x468   : > { %730 = dma.vmem_to_hbm [thread:$0]  (%p1281_p0), %s1222_s17, 128, %s1220_s27, %s520_s29  }
 0x469 PF: > { %s545_s28 = sand.u32 1, %s963_s12   ;;  %p1282_p7 = scmp.ne.s32.totalorder %s1272_s19, 0 }
 0x46a   : > { %p1283_p9 = scmp.ge.s32.totalorder %s975_s15, 2  ;;  %s546_s22 = scalar_lea.sflag [#allocation4], %s545_s28 }
 0x46c   : > { %p744_p12 = pnand %p1283_p9, %p1282_p7 }
 0x46e   : > { %958 = dma.done.wait (!%p744_p12), %s546_s22, 128  }
 0x46f   : > { %960 = vsyncadd (!%p744_p12), %s546_s22, 4294967168  ;;  %p17_p2 = scmp.ge.s32.totalorder %s1115_s4, 4   ;;  %s1284_s12 = smov %s967_s13 }
 0x470   : > { %s1285_s13 = smov %s971_s14  ;;  %s1286_s14 = smov %s1131_s7 }
 0x471   : > { %s1287_s15 = smov %s1115_s4  ;;  %19 = sbr.rel (!%p17_p2) target bundleno = 6 (0x6), region = 86 }
 0x478   :  { %551 = vsyncpa [#allocation3], 1 }
 0x479   :  { %553 = vsyncpa [#allocation3 + $0x1], 1 }
 0x47a   :  { %554 = vsyncpa [#allocation6], 1 }
 0x47b   :  { %555 = vsyncpa [#allocation4], 1 }
 0x47c   :  { %557 = vsyncpa [#allocation4 + $0x1], 1 }

</bundles_post_ra>
